<compile_context>
chip_gen: v5e
topology: v5e:2x2
jax: 0.10.0
libtpu: 0.0.40
codegen_flags: <defaults>
</compile_context>

<pallas_src>
import functools

import jax
import jax.numpy as jnp
import numpy as np
from jax.experimental import pallas as pl
from jax.experimental.pallas import tpu as pltpu


def _round_up(x, m):
    return (x + m - 1) // m * m


def _convlstm_kernel(x_ref, h_ref, c_ref, w_ref, b_ref, h_out_ref, c_out_ref,
                     comb_ref, col_ref, *, H, W, Ci, Ch, KH, KW, Cin_pad, lpad):
    # x_ref    : (1, Ci, H*W)              input slab  (channels x flat-spatial)
    # h_ref    : (1, Ch, H*W)              hidden state
    # c_ref    : (1, Ch, H*W)              cell state
    # w_ref    : (4*Ch, KH*KW*Cin_pad)     conv weights, im2col-ordered
    # b_ref    : (4*Ch, 1)                 conv bias (broadcast over lanes)
    # outputs  : (1, Ch, H*W) each
    # comb_ref : VMEM (Cin_pad, lpad+H*W+fpad)  flat-padded [x, h] concat
    # col_ref  : VMEM (KH*KW*Cin_pad, H*W)      im2col buffer
    HW = H * W
    ph, pw = KH // 2, KW // 2
    Cin = Ci + Ch

    # Zero once per invocation: the flat margins (vertical zero padding) and
    # the dummy channel rows (Cin..Cin_pad) stay zero, only the interior is
    # overwritten below.  (16, ~400) f32 -> a handful of vreg stores.
    comb_ref[...] = jnp.zeros_like(comb_ref)

    # ---- fused torch.cat([x, h], dim=channel) + spatial zero-pad ----
    comb_ref[0:Ci, lpad:lpad + HW] = x_ref[0].astype(jnp.float32)
    comb_ref[Ci:Cin, lpad:lpad + HW] = h_ref[0].astype(jnp.float32)

    # Column (x') index of each flattened output pixel, for the horizontal
    # zero-padding masks.  Computed once; DCE'd if KW == 1.
    colx = jax.lax.broadcasted_iota(jnp.int32, (Cin_pad, HW), 1) % W

    # ---- im2col: each tap is a contiguous lane slice of the flat-padded
    # buffer (flat shift (dy-ph)*W + (dx-pw) realises both spatial offsets);
    # horizontal out-of-bounds columns are zeroed with a static lane mask. ----
    for t in range(KH * KW):
        dy, dx = t // KW, t % KW
        shift = (dy - ph) * W + (dx - pw)
        start = lpad + shift
        view = comb_ref[:, start:start + HW]            # (Cin_pad, H*W)
        if dx - pw < 0:
            view = jnp.where(colx >= (pw - dx), view, 0.0)
        elif dx - pw > 0:
            view = jnp.where(colx < W - (dx - pw), view, 0.0)
        col_ref[t * Cin_pad:(t + 1) * Cin_pad, :] = view

    # ---- one MXU matmul over K = KH*KW*Cin_pad; lane-dense (4*Ch, H*W) ----
    acc = jnp.dot(w_ref[...], col_ref[...],
                  preferred_element_type=jnp.float32)    # (4*Ch, H*W)
    acc = acc + b_ref[...]                               # (4*Ch, 1) lane-bcast

    # ---- LSTM gates: fused sigmoid over i|f|o, tanh over g ----
    ifo = jax.nn.sigmoid(acc[0:3 * Ch, :])
    g = jnp.tanh(acc[3 * Ch:4 * Ch, :])
    i_g = ifo[0:Ch, :]
    f_g = ifo[Ch:2 * Ch, :]
    o_g = ifo[2 * Ch:3 * Ch, :]

    c_cur = c_ref[0].astype(jnp.float32)
    c_next = f_g * c_cur + i_g * g
    h_next = o_g * jnp.tanh(c_next)

    c_out_ref[0] = c_next.astype(c_out_ref.dtype)
    h_out_ref[0] = h_next.astype(h_out_ref.dtype)


def convlstm_cell_pallas(x_nchw, h_nchw, c_nchw, w_oihw, bias, kernel_size):
    """One ConvLSTMCell step.  x/h/c are NCHW; weights OIHW (4*Ch, Ci+Ch, KH, KW)."""
    B, Ci, H, W = x_nchw.shape
    Ch = h_nchw.shape[1]
    KH, KW = kernel_size
    if KH % 2 == 0 or KW % 2 == 0:
        # padding = kernel_size // 2 only gives 'same' output for odd kernels
        # (matches the PyTorch module's intent).
        raise ValueError("ConvLSTMCell Pallas kernel requires odd kernel sizes")
    ph, pw = KH // 2, KW // 2
    Cin = Ci + Ch
    Cin_pad = _round_up(Cin, 8)          # sublane-aligned tap blocks
    HW = H * W
    fpad = ph * W + pw                   # flat padding needed for the taps
    lpad = _round_up(fpad, 128)          # left margin rounded so the interior
    tot_lanes = lpad + HW + fpad         # starts lane-tile aligned

    # Weights -> (4*Ch, KH*KW*Cin_pad), column order ((dy*KW+dx)*Cin_pad + ci),
    # padded with zero columns for the dummy channels.  Tiny host-side reshape
    # (would be hoisted out of a sequence scan in a full ConvLSTM).
    w_p = jnp.pad(w_oihw.astype(jnp.float32),
                  ((0, 0), (0, Cin_pad - Cin), (0, 0), (0, 0)))
    w2d = jnp.transpose(w_p, (0, 2, 3, 1)).reshape(4 * Ch, KH * KW * Cin_pad)
    b2d = bias.astype(jnp.float32).reshape(4 * Ch, 1)

    # Free (contiguous) reshapes to the kernel's lane-dense layout.
    x2 = x_nchw.reshape(B, Ci, HW)
    h2 = h_nchw.reshape(B, Ch, HW)
    c2 = c_nchw.reshape(B, Ch, HW)

    kernel = functools.partial(_convlstm_kernel, H=H, W=W, Ci=Ci, Ch=Ch,
                               KH=KH, KW=KW, Cin_pad=Cin_pad, lpad=lpad)

    h_out, c_out = pl.pallas_call(
        kernel,
        out_shape=(jax.ShapeDtypeStruct((B, Ch, HW), x_nchw.dtype),
                   jax.ShapeDtypeStruct((B, Ch, HW), x_nchw.dtype)),
        grid=(B,),
        in_specs=[
            pl.BlockSpec((1, Ci, HW), lambda b: (b, 0, 0)),
            pl.BlockSpec((1, Ch, HW), lambda b: (b, 0, 0)),
            pl.BlockSpec((1, Ch, HW), lambda b: (b, 0, 0)),
            pl.BlockSpec((4 * Ch, KH * KW * Cin_pad), lambda b: (0, 0)),
            pl.BlockSpec((4 * Ch, 1), lambda b: (0, 0)),
        ],
        out_specs=(
            pl.BlockSpec((1, Ch, HW), lambda b: (b, 0, 0)),
            pl.BlockSpec((1, Ch, HW), lambda b: (b, 0, 0)),
        ),
        scratch_shapes=[
            pltpu.VMEM((Cin_pad, tot_lanes), jnp.float32),        # padded [x,h]
            pltpu.VMEM((KH * KW * Cin_pad, HW), jnp.float32),     # im2col
        ],
        compiler_params=pltpu.CompilerParams(
            dimension_semantics=("parallel",)),
    )(x2, h2, c2, w2d, b2d)

    return h_out.reshape(B, Ch, H, W), c_out.reshape(B, Ch, H, W)


def convlstm_cell_ref(x_nchw, h_nchw, c_nchw, w_oihw, bias):
    """Pure-JAX reference matching the PyTorch ConvLSTMCell.forward semantics."""
    Ch = h_nchw.shape[1]
    combined = jnp.concatenate([x_nchw, h_nchw], axis=1)
    conv = jax.lax.conv_general_dilated(
        combined, w_oihw, window_strides=(1, 1), padding="SAME",
        dimension_numbers=("NCHW", "OIHW", "NCHW"),
        precision=jax.lax.Precision.HIGHEST)
    conv = conv + bias[None, :, None, None]
    cc_i = conv[:, 0 * Ch:1 * Ch]
    cc_f = conv[:, 1 * Ch:2 * Ch]
    cc_o = conv[:, 2 * Ch:3 * Ch]
    cc_g = conv[:, 3 * Ch:4 * Ch]
    i = jax.nn.sigmoid(cc_i)
    f = jax.nn.sigmoid(cc_f)
    o = jax.nn.sigmoid(cc_o)
    g = jnp.tanh(cc_g)
    c_next = f * c_nchw + i * g
    h_next = o * jnp.tanh(c_next)
    return h_next, c_next


if __name__ == "__main__":
    # Module config (matches ConvLSTMCell.__init__): input_size=(16,16),
    # input_dim=4, hidden_dim=8, kernel_size=(3,3), bias=True.
    B, Ci, H, W = 2, 4, 16, 16
    Ch, KH, KW = 8, 3, 3
    Cin = Ci + Ch

    key = jax.random.PRNGKey(0)
    kx, kh, kc, kw_, kb = jax.random.split(key, 5)

    # PyTorch-native NCHW layouts; the recurrent states (h, c) are produced
    # and consumed in NCHW, so no transposes are paid at the kernel boundary.
    x = jax.random.normal(kx, (B, Ci, H, W), jnp.float32)
    h = jax.random.normal(kh, (B, Ch, H, W), jnp.float32)
    c = jax.random.normal(kc, (B, Ch, H, W), jnp.float32)

    # Conv parameters in OIHW = (4*Ch, Ci+Ch, KH, KW), same layout as the
    # PyTorch nn.Conv2d weight (gate order i|f|o|g along the output channels).
    w_oihw = 0.1 * jax.random.normal(kw_, (4 * Ch, Cin, KH, KW), jnp.float32)
    bias = 0.1 * jax.random.normal(kb, (4 * Ch,), jnp.float32)

    h_next, c_next = convlstm_cell_pallas(x, h, c, w_oihw, bias, (KH, KW))
    jax.block_until_ready((h_next, c_next))

    h_ref, c_ref = convlstm_cell_ref(x, h, c, w_oihw, bias)
    np.testing.assert_allclose(np.asarray(h_next), np.asarray(h_ref),
                               rtol=1e-4, atol=1e-4)
    np.testing.assert_allclose(np.asarray(c_next), np.asarray(c_ref),
                               rtol=1e-4, atol=1e-4)

    print("KERNEL_OK")
</pallas_src>

<mosaic_0001>
module attributes {stable_mosaic.version = 11 : i64} {
  func.func @_convlstm_kernel(%arg0: i32, %arg1: memref<1x4x256xf32, #tpu.memory_space<vmem>>, %arg2: memref<1x8x256xf32, #tpu.memory_space<vmem>>, %arg3: memref<1x8x256xf32, #tpu.memory_space<vmem>>, %arg4: memref<32x144xf32, #tpu.memory_space<vmem>>, %arg5: memref<32x1xf32, #tpu.memory_space<vmem>>, %arg6: memref<1x8x256xf32, #tpu.memory_space<vmem>>, %arg7: memref<1x8x256xf32, #tpu.memory_space<vmem>>, %arg8: memref<16x401xf32, #tpu.memory_space<vmem>>, %arg9: memref<144x256xf32, #tpu.memory_space<vmem>>) attributes {dimension_semantics = [#tpu.dimension_semantics<parallel>], iteration_bounds = array<i64: 2>, scalar_prefetch = 0 : i64, scratch_operands = 2 : i64, tpu.core_type = #tpu.core_type<tc>, window_params = [{transform_indices = @transform_0, window_bounds = array<i64: 1, 4, 256>}, {transform_indices = @transform_1, window_bounds = array<i64: 1, 8, 256>}, {transform_indices = @transform_2, window_bounds = array<i64: 1, 8, 256>}, {pipeline_mode = #tpu.pipeline_mode<synchronous>, transform_indices = @transform_3, window_bounds = array<i64: 32, 144>}, {pipeline_mode = #tpu.pipeline_mode<synchronous>, transform_indices = @transform_4, window_bounds = array<i64: 32, 1>}, {transform_indices = @transform_5, window_bounds = array<i64: 1, 8, 256>}, {transform_indices = @transform_6, window_bounds = array<i64: 1, 8, 256>}]} {
    %cst = arith.constant 0.000000e+00 : f32
    %0 = vector.broadcast %cst : f32 to vector<16x401xf32>
    %c0 = arith.constant 0 : index
    %c0_0 = arith.constant 0 : index
    %1 = vector.load %arg8[%c0, %c0_0] : memref<16x401xf32, #tpu.memory_space<vmem>>, vector<16x401xf32>
    tpu.vector_store %arg8[%c0, %c0_0], %0 {strides = array<i32>} : memref<16x401xf32, #tpu.memory_space<vmem>>, vector<16x401xf32>,
    %c0_1 = arith.constant 0 : index
    %c0_2 = arith.constant 0 : index
    %c0_3 = arith.constant 0 : index
    %2 = vector.load %arg1[%c0_1, %c0_2, %c0_3] : memref<1x4x256xf32, #tpu.memory_space<vmem>>, vector<1x4x256xf32>
    %3 = vector.shape_cast %2 : vector<1x4x256xf32> to vector<4x256xf32>
    %c0_4 = arith.constant 0 : index
    %c128 = arith.constant 128 : index
    %4 = vector.load %arg8[%c0_4, %c128] : memref<16x401xf32, #tpu.memory_space<vmem>>, vector<4x256xf32>
    tpu.vector_store %arg8[%c0_4, %c128], %3 {strides = array<i32>} : memref<16x401xf32, #tpu.memory_space<vmem>>, vector<4x256xf32>,
    %c0_5 = arith.constant 0 : index
    %c0_6 = arith.constant 0 : index
    %c0_7 = arith.constant 0 : index
    %5 = vector.load %arg2[%c0_5, %c0_6, %c0_7] : memref<1x8x256xf32, #tpu.memory_space<vmem>>, vector<1x8x256xf32>
    %6 = vector.shape_cast %5 : vector<1x8x256xf32> to vector<8x256xf32>
    %c4 = arith.constant 4 : index
    %c128_8 = arith.constant 128 : index
    %7 = vector.load %arg8[%c4, %c128_8] : memref<16x401xf32, #tpu.memory_space<vmem>>, vector<8x256xf32>
    tpu.vector_store %arg8[%c4, %c128_8], %6 {strides = array<i32>} : memref<16x401xf32, #tpu.memory_space<vmem>>, vector<8x256xf32>,
    %8 = tpu.iota {dimensions = array<i32: 1>} : vector<16x256xi32>
    %c16_i32 = arith.constant 16 : i32
    %c0_i32 = arith.constant 0 : i32
    %9 = arith.cmpi eq, %c16_i32, %c0_i32 : i32
    %c1_i32 = arith.constant 1 : i32
    %10 = arith.select %9, %c1_i32, %c16_i32 : i32
    %11 = vector.broadcast %10 : i32 to vector<16x256xi32>
    %12 = arith.remsi %8, %11 : vector<16x256xi32>
    %c0_i32_9 = arith.constant 0 : i32
    %13 = vector.broadcast %c0_i32_9 : i32 to vector<16x256xi32>
    %14 = arith.cmpi ne, %12, %13 : vector<16x256xi32>
    %c0_i32_10 = arith.constant 0 : i32
    %15 = vector.broadcast %c0_i32_10 : i32 to vector<16x256xi32>
    %16 = arith.cmpi slt, %12, %15 : vector<16x256xi32>
    %c0_i32_11 = arith.constant 0 : i32
    %17 = arith.cmpi slt, %10, %c0_i32_11 : i32
    %18 = vector.broadcast %17 : i1 to vector<16x256xi1>
    %19 = vector.broadcast %18 : vector<16x256xi1> to vector<16x256xi1>
    %20 = arith.xori %16, %19 : vector<16x256xi1>
    %21 = arith.andi %20, %14 : vector<16x256xi1>
    %22 = vector.broadcast %10 : i32 to vector<16x256xi32>
    %23 = arith.addi %12, %22 : vector<16x256xi32>
    %24 = arith.select %21, %23, %12 : vector<16x256xi1>, vector<16x256xi32>
    %c0_12 = arith.constant 0 : index
    %c111 = arith.constant 111 : index
    %25 = vector.load %arg8[%c0_12, %c111] : memref<16x401xf32, #tpu.memory_space<vmem>>, vector<16x256xf32>
    %c1_i32_13 = arith.constant 1 : i32
    %26 = vector.broadcast %c1_i32_13 : i32 to vector<16x256xi32>
    %27 = arith.cmpi sge, %24, %26 : vector<16x256xi32>
    %cst_14 = arith.constant 0.000000e+00 : f32
    %28 = vector.broadcast %cst_14 : f32 to vector<16x256xf32>
    %29 = arith.select %27, %25, %28 : vector<16x256xi1>, vector<16x256xf32>
    %c0_15 = arith.constant 0 : index
    %c0_16 = arith.constant 0 : index
    %30 = vector.load %arg9[%c0_15, %c0_16] : memref<144x256xf32, #tpu.memory_space<vmem>>, vector<16x256xf32>
    tpu.vector_store %arg9[%c0_15, %c0_16], %29 {strides = array<i32>} : memref<144x256xf32, #tpu.memory_space<vmem>>, vector<16x256xf32>,
    %c0_17 = arith.constant 0 : index
    %c112 = arith.constant 112 : index
    %31 = vector.load %arg8[%c0_17, %c112] : memref<16x401xf32, #tpu.memory_space<vmem>>, vector<16x256xf32>
    %c16 = arith.constant 16 : index
    %c0_18 = arith.constant 0 : index
    %32 = vector.load %arg9[%c16, %c0_18] : memref<144x256xf32, #tpu.memory_space<vmem>>, vector<16x256xf32>
    tpu.vector_store %arg9[%c16, %c0_18], %31 {strides = array<i32>} : memref<144x256xf32, #tpu.memory_space<vmem>>, vector<16x256xf32>,
    %c0_19 = arith.constant 0 : index
    %c113 = arith.constant 113 : index
    %33 = vector.load %arg8[%c0_19, %c113] : memref<16x401xf32, #tpu.memory_space<vmem>>, vector<16x256xf32>
    %c15_i32 = arith.constant 15 : i32
    %34 = vector.broadcast %c15_i32 : i32 to vector<16x256xi32>
    %35 = arith.cmpi slt, %24, %34 : vector<16x256xi32>
    %cst_20 = arith.constant 0.000000e+00 : f32
    %36 = vector.broadcast %cst_20 : f32 to vector<16x256xf32>
    %37 = arith.select %35, %33, %36 : vector<16x256xi1>, vector<16x256xf32>
    %c32 = arith.constant 32 : index
    %c0_21 = arith.constant 0 : index
    %38 = vector.load %arg9[%c32, %c0_21] : memref<144x256xf32, #tpu.memory_space<vmem>>, vector<16x256xf32>
    tpu.vector_store %arg9[%c32, %c0_21], %37 {strides = array<i32>} : memref<144x256xf32, #tpu.memory_space<vmem>>, vector<16x256xf32>,
    %c0_22 = arith.constant 0 : index
    %c127 = arith.constant 127 : index
    %39 = vector.load %arg8[%c0_22, %c127] : memref<16x401xf32, #tpu.memory_space<vmem>>, vector<16x256xf32>
    %c1_i32_23 = arith.constant 1 : i32
    %40 = vector.broadcast %c1_i32_23 : i32 to vector<16x256xi32>
    %41 = arith.cmpi sge, %24, %40 : vector<16x256xi32>
    %cst_24 = arith.constant 0.000000e+00 : f32
    %42 = vector.broadcast %cst_24 : f32 to vector<16x256xf32>
    %43 = arith.select %41, %39, %42 : vector<16x256xi1>, vector<16x256xf32>
    %c48 = arith.constant 48 : index
    %c0_25 = arith.constant 0 : index
    %44 = vector.load %arg9[%c48, %c0_25] : memref<144x256xf32, #tpu.memory_space<vmem>>, vector<16x256xf32>
    tpu.vector_store %arg9[%c48, %c0_25], %43 {strides = array<i32>} : memref<144x256xf32, #tpu.memory_space<vmem>>, vector<16x256xf32>,
    %c0_26 = arith.constant 0 : index
    %c128_27 = arith.constant 128 : index
    %45 = vector.load %arg8[%c0_26, %c128_27] : memref<16x401xf32, #tpu.memory_space<vmem>>, vector<16x256xf32>
    %c64 = arith.constant 64 : index
    %c0_28 = arith.constant 0 : index
    %46 = vector.load %arg9[%c64, %c0_28] : memref<144x256xf32, #tpu.memory_space<vmem>>, vector<16x256xf32>
    tpu.vector_store %arg9[%c64, %c0_28], %45 {strides = array<i32>} : memref<144x256xf32, #tpu.memory_space<vmem>>, vector<16x256xf32>,
    %c0_29 = arith.constant 0 : index
    %c129 = arith.constant 129 : index
    %47 = vector.load %arg8[%c0_29, %c129] : memref<16x401xf32, #tpu.memory_space<vmem>>, vector<16x256xf32>
    %c15_i32_30 = arith.constant 15 : i32
    %48 = vector.broadcast %c15_i32_30 : i32 to vector<16x256xi32>
    %49 = arith.cmpi slt, %24, %48 : vector<16x256xi32>
    %cst_31 = arith.constant 0.000000e+00 : f32
    %50 = vector.broadcast %cst_31 : f32 to vector<16x256xf32>
    %51 = arith.select %49, %47, %50 : vector<16x256xi1>, vector<16x256xf32>
    %c80 = arith.constant 80 : index
    %c0_32 = arith.constant 0 : index
    %52 = vector.load %arg9[%c80, %c0_32] : memref<144x256xf32, #tpu.memory_space<vmem>>, vector<16x256xf32>
    tpu.vector_store %arg9[%c80, %c0_32], %51 {strides = array<i32>} : memref<144x256xf32, #tpu.memory_space<vmem>>, vector<16x256xf32>,
    %c0_33 = arith.constant 0 : index
    %c143 = arith.constant 143 : index
    %53 = vector.load %arg8[%c0_33, %c143] : memref<16x401xf32, #tpu.memory_space<vmem>>, vector<16x256xf32>
    %c1_i32_34 = arith.constant 1 : i32
    %54 = vector.broadcast %c1_i32_34 : i32 to vector<16x256xi32>
    %55 = arith.cmpi sge, %24, %54 : vector<16x256xi32>
    %cst_35 = arith.constant 0.000000e+00 : f32
    %56 = vector.broadcast %cst_35 : f32 to vector<16x256xf32>
    %57 = arith.select %55, %53, %56 : vector<16x256xi1>, vector<16x256xf32>
    %c96 = arith.constant 96 : index
    %c0_36 = arith.constant 0 : index
    %58 = vector.load %arg9[%c96, %c0_36] : memref<144x256xf32, #tpu.memory_space<vmem>>, vector<16x256xf32>
    tpu.vector_store %arg9[%c96, %c0_36], %57 {strides = array<i32>} : memref<144x256xf32, #tpu.memory_space<vmem>>, vector<16x256xf32>,
    %c0_37 = arith.constant 0 : index
    %c144 = arith.constant 144 : index
    %59 = vector.load %arg8[%c0_37, %c144] : memref<16x401xf32, #tpu.memory_space<vmem>>, vector<16x256xf32>
    %c112_38 = arith.constant 112 : index
    %c0_39 = arith.constant 0 : index
    %60 = vector.load %arg9[%c112_38, %c0_39] : memref<144x256xf32, #tpu.memory_space<vmem>>, vector<16x256xf32>
    tpu.vector_store %arg9[%c112_38, %c0_39], %59 {strides = array<i32>} : memref<144x256xf32, #tpu.memory_space<vmem>>, vector<16x256xf32>,
    %c0_40 = arith.constant 0 : index
    %c145 = arith.constant 145 : index
    %61 = vector.load %arg8[%c0_40, %c145] : memref<16x401xf32, #tpu.memory_space<vmem>>, vector<16x256xf32>
    %c15_i32_41 = arith.constant 15 : i32
    %62 = vector.broadcast %c15_i32_41 : i32 to vector<16x256xi32>
    %63 = arith.cmpi slt, %24, %62 : vector<16x256xi32>
    %cst_42 = arith.constant 0.000000e+00 : f32
    %64 = vector.broadcast %cst_42 : f32 to vector<16x256xf32>
    %65 = arith.select %63, %61, %64 : vector<16x256xi1>, vector<16x256xf32>
    %c128_43 = arith.constant 128 : index
    %c0_44 = arith.constant 0 : index
    %66 = vector.load %arg9[%c128_43, %c0_44] : memref<144x256xf32, #tpu.memory_space<vmem>>, vector<16x256xf32>
    tpu.vector_store %arg9[%c128_43, %c0_44], %65 {strides = array<i32>} : memref<144x256xf32, #tpu.memory_space<vmem>>, vector<16x256xf32>,
    %c0_45 = arith.constant 0 : index
    %c0_46 = arith.constant 0 : index
    %67 = vector.load %arg4[%c0_45, %c0_46] : memref<32x144xf32, #tpu.memory_space<vmem>>, vector<32x144xf32>
    %c0_47 = arith.constant 0 : index
    %c0_48 = arith.constant 0 : index
    %68 = vector.load %arg9[%c0_47, %c0_48] : memref<144x256xf32, #tpu.memory_space<vmem>>, vector<144x256xf32>
    %cst_49 = arith.constant dense<0.000000e+00> : vector<32x256xf32>
    %69 = tpu.matmul %67, %68, %cst_49 {dimension_numbers = #tpu.dot_dimension_numbers<[1], [0], [0], [1], [0, 0, 1, 1], [], []>} : vector<32x144xf32>, vector<144x256xf32>, vector<32x256xf32> -> vector<32x256xf32>
    %c0_50 = arith.constant 0 : index
    %c0_51 = arith.constant 0 : index
    %70 = vector.load %arg5[%c0_50, %c0_51] : memref<32x1xf32, #tpu.memory_space<vmem>>, vector<32x1xf32>
    %71 = vector.broadcast %70 : vector<32x1xf32> to vector<32x256xf32>
    %72 = arith.addf %69, %71 : vector<32x256xf32>
    %73 = vector.extract_strided_slice %72 {offsets = [0, 0], sizes = [24, 256], strides = [1, 1]} : vector<32x256xf32> to vector<24x256xf32>
    %74 = arith.negf %73 : vector<24x256xf32>
    %75 = math.exp %74 : vector<24x256xf32>
    %cst_52 = arith.constant 1.000000e+00 : f32
    %76 = vector.broadcast %cst_52 : f32 to vector<24x256xf32>
    %77 = arith.addf %76, %75 : vector<24x256xf32>
    %78 = arith.divf %76, %77 : vector<24x256xf32>
    %79 = vector.extract_strided_slice %72 {offsets = [24, 0], sizes = [8, 256], strides = [1, 1]} : vector<32x256xf32> to vector<8x256xf32>
    %80 = math.tanh %79 : vector<8x256xf32>
    %81 = vector.extract_strided_slice %78 {offsets = [0, 0], sizes = [8, 256], strides = [1, 1]} : vector<24x256xf32> to vector<8x256xf32>
    %82 = vector.extract_strided_slice %78 {offsets = [8, 0], sizes = [8, 256], strides = [1, 1]} : vector<24x256xf32> to vector<8x256xf32>
    %83 = vector.extract_strided_slice %78 {offsets = [16, 0], sizes = [8, 256], strides = [1, 1]} : vector<24x256xf32> to vector<8x256xf32>
    %c0_53 = arith.constant 0 : index
    %c0_54 = arith.constant 0 : index
    %c0_55 = arith.constant 0 : index
    %84 = vector.load %arg3[%c0_53, %c0_54, %c0_55] : memref<1x8x256xf32, #tpu.memory_space<vmem>>, vector<1x8x256xf32>
    %85 = vector.shape_cast %84 : vector<1x8x256xf32> to vector<8x256xf32>
    %86 = arith.mulf %82, %85 : vector<8x256xf32>
    %87 = arith.mulf %81, %80 : vector<8x256xf32>
    %88 = arith.addf %86, %87 : vector<8x256xf32>
    %89 = math.tanh %88 : vector<8x256xf32>
    %90 = arith.mulf %83, %89 : vector<8x256xf32>
    %c0_56 = arith.constant 0 : index
    %c0_57 = arith.constant 0 : index
    %c0_58 = arith.constant 0 : index
    %91 = vector.load %arg7[%c0_56, %c0_57, %c0_58] : memref<1x8x256xf32, #tpu.memory_space<vmem>>, vector<1x8x256xf32>
    %92 = vector.shape_cast %91 : vector<1x8x256xf32> to vector<8x256xf32>
    %93 = vector.shape_cast %88 : vector<8x256xf32> to vector<1x8x256xf32>
    tpu.vector_store %arg7[%c0_56, %c0_57, %c0_58], %93 {strides = array<i32>} : memref<1x8x256xf32, #tpu.memory_space<vmem>>, vector<1x8x256xf32>,
    %c0_59 = arith.constant 0 : index
    %c0_60 = arith.constant 0 : index
    %c0_61 = arith.constant 0 : index
    %94 = vector.load %arg6[%c0_59, %c0_60, %c0_61] : memref<1x8x256xf32, #tpu.memory_space<vmem>>, vector<1x8x256xf32>
    %95 = vector.shape_cast %94 : vector<1x8x256xf32> to vector<8x256xf32>
    %96 = vector.shape_cast %90 : vector<8x256xf32> to vector<1x8x256xf32>
    tpu.vector_store %arg6[%c0_59, %c0_60, %c0_61], %96 {strides = array<i32>} : memref<1x8x256xf32, #tpu.memory_space<vmem>>, vector<1x8x256xf32>,
    return
  }
  func.func @transform_0(%arg0: i32) -> (i32, i32, i32) {
    %c0_i32 = arith.constant 0 : i32
    %c0_i32_0 = arith.constant 0 : i32
    %c0_i32_1 = arith.constant 0 : i32
    return %arg0, %c0_i32, %c0_i32_0 : i32, i32, i32
  }
  func.func @transform_1(%arg0: i32) -> (i32, i32, i32) {
    %c0_i32 = arith.constant 0 : i32
    %c0_i32_0 = arith.constant 0 : i32
    %c0_i32_1 = arith.constant 0 : i32
    return %arg0, %c0_i32, %c0_i32_0 : i32, i32, i32
  }
  func.func @transform_2(%arg0: i32) -> (i32, i32, i32) {
    %c0_i32 = arith.constant 0 : i32
    %c0_i32_0 = arith.constant 0 : i32
    %c0_i32_1 = arith.constant 0 : i32
    return %arg0, %c0_i32, %c0_i32_0 : i32, i32, i32
  }
  func.func @transform_3(%arg0: i32) -> (i32, i32) {
    %c0_i32 = arith.constant 0 : i32
    %c0_i32_0 = arith.constant 0 : i32
    %c0_i32_1 = arith.constant 0 : i32
    return %c0_i32, %c0_i32_0 : i32, i32
  }
  func.func @transform_4(%arg0: i32) -> (i32, i32) {
    %c0_i32 = arith.constant 0 : i32
    %c0_i32_0 = arith.constant 0 : i32
    %c0_i32_1 = arith.constant 0 : i32
    return %c0_i32, %c0_i32_0 : i32, i32
  }
  func.func @transform_5(%arg0: i32) -> (i32, i32, i32) {
    %c0_i32 = arith.constant 0 : i32
    %c0_i32_0 = arith.constant 0 : i32
    %c0_i32_1 = arith.constant 0 : i32
    return %arg0, %c0_i32, %c0_i32_0 : i32, i32, i32
  }
  func.func @transform_6(%arg0: i32) -> (i32, i32, i32) {
    %c0_i32 = arith.constant 0 : i32
    %c0_i32_0 = arith.constant 0 : i32
    %c0_i32_1 = arith.constant 0 : i32
    return %arg0, %c0_i32, %c0_i32_0 : i32, i32, i32
  }
}

</mosaic_0001>

<bundles_post_ra>
// kernel: tpu_custom_call.1
= control target key start
LH: loop header
LB: loop body
LE: loop exit
PB: predicated region body
PF: predicated region fallthrough
CT: control target
= control target key end

     0   :  { %s2227_s0 = inlined_call_operand.hbm [shape: f32[2,4,256], index: 0, kind: input, shape index: {}]   ;;  %s2228_s1 = inlined_call_operand.vmem [shape: f32[2,8,256], index: 1, kind: input, shape index: {}]   ;;  %s2229_s2 = inlined_call_operand.hbm [shape: f32[2,8,256], index: 2, kind: input, shape index: {}]   ;;  %s2230_s3 = inlined_call_operand.hbm [shape: f32[32,144], index: 3, kind: input, shape index: {}]   ;;  %s2231_s4 = inlined_call_operand.vmem [shape: f32[32,1], index: 4, kind: input, shape index: {}]   ;;  %s2232_s5 = inlined_call_operand.hbm [shape: f32[2,8,256], index: 5, kind: output, shape index: {0}]   ;;  %s2233_s6 = inlined_call_operand.hbm [shape: f32[2,8,256], index: 6, kind: output, shape index: {1}]  }
   0x1   :  { %2238 = sst [smem:[#allocation22_spill]] %s2230_s3 }
   0x2   :  { %12 = vsyncpa [#allocation5], 0 }
   0x3   :  { %14 = vsyncpa [#allocation5 + $0x1], 0 }
   0x4   :  { %15 = vsyncpa [#allocation8], 0 }
   0x5   :  { %17 = vsyncpa [#allocation8 + $0x1], 0 }
   0x6   :  { %18 = vsyncpa [#allocation6], 0 }
   0x7   :  { %20 = vsyncpa [#allocation6 + $0x1], 0 }
   0x8   :  { %21 = vsyncpa [#allocation12], 0 }
   0x9   :  { %23 = vsyncpa [#allocation12 + $0x1], 0  ;;  %s1716_s21 = smov 0   ;;  %s1718_s22 = smov 0  }
   0xa   :  { %s1720_s23 = smov 0   ;;  %s1722_s24 = smov 0  }
   0xb LB: > { %2239 = sst [smem:[#allocation18_spill]] %s1662_s23  ;;  %s1740_s28 = sadd.s32 4294967295, %s1666_s24   ;;  %s1666_s24 = sphi %s1722_s24, %s2270_s24   ;;  %s1662_s23 = sphi %s1720_s23, %s2272_s23   ;;  %s1658_s22 = sphi %s1718_s22, %s2274_s22   ;;  %s1654_s21 = sphi %s1716_s21, %s2273_s21  }
   0xc   : > { %s2240_s3 = sld [smem:[#allocation22_spill]]  ;;  %p1258_p0 = scmp.ge.s32.totalorder %s1666_s24, 1 }
   0xd   : > { %p50_p1 = scmp.eq.s32.totalorder %s1740_s28, 0  ;;  %p206_p2 = scmp.lt.s32.totalorder %s1666_s24, 3 }
   0xe   : > { %s1668_s30 = smov [#allocation9]   ;;  %s1669_s8 = smov 256  }
   0xf   : > { %p1745_p3 = pnand %p1258_p0, %p206_p2  ;;  %s219_s7 = sshll.u32 %s1668_s30, 4  ;;  %s220_s7 = int_to_ptr.vmem [resolvable:$true] %s219_s7 }
  0x10   : > { %s1670_s9 = smov 16   ;;  %s1257_s10 = sadd.s32 4294967294, %s1666_s24  }
  0x11   : > { %p1338_p4 = pneg %p1745_p3  ;;  %s1756_s11 = sadd.s32 1, %s1666_s24  }
  0x12   : > { %s217_s27 = sshll.u32 %s2240_s3, 4  ;;  %2242 = sst [smem:[#allocation19_spill]] %s1756_s11  ;;  %s218_s27 = int_to_ptr.hbm [resolvable:$true] %s217_s27 }
  0x13   : > { %p1339_p6 = pnand %p1338_p4, %p50_p1  ;;  %s36_s12 = sadd.s32 1, %s1662_s23 }
  0x14   : > { %s33_s13 = ssub.s32 %s1666_s24, %s1756_s11  ;;  %p43_p7 = scmp.ne.s32.totalorder %s1662_s23, %s1658_s22 }
  0x15   : > { %1341 = dma.hbm_to_vmem [thread:$0]  (!%p1339_p6), %s218_s27, 1024, %s220_s7, [#allocation8], %s1669_s8, %s1669_s8, %s1670_s9  }
  0x16   : > { %p34_p8 = scmp.eq.s32.totalorder %s33_s13, 0  ;;  %p44_p9 = scmp.eq.s32.totalorder %s1666_s24, 0 }
  0x17   : > { %p49_p10 = scmp.ne.s32.totalorder %s1658_s22, %s1654_s21  ;;  %p167_p11 = scmp.eq.s32.totalorder %s1740_s28, 1 }
  0x18   : > { %s1768_s14 = scalar_select %p34_p8, %s1662_s23, %s36_s12  }
  0x19   : > { %p1770_p12 = por %p44_p9, %p43_p7  ;;  %p1776_p13 = por %p50_p1, %p49_p10 }
  0x1a   : > { %2243 = sst [smem:[#allocation20_spill]] %s1768_s14  ;;  %p1780_p0 = por %p167_p11, %p43_p7 }
  0x1b   : > { %p173_p2 = scmp.eq.s32.totalorder %s1257_s10, 1  ;;  %p1357_p4 = scmp.lt.s32.totalorder %s1666_s24, 2 }
  0x1c   : > { %s1786_s18 = sand.u32 1, %s1662_s23   ;;  %s1297_s25 = sshll.u32 %s1666_s24, 3 }
  0x1d   : > { %p1788_p6 = por %p173_p2, %p49_p10  ;;  %s1261_s20 = sshll.u32 %s1786_s18, 3 }
  0x1e   : > { %s245_s30 = scalar_lea.hbm %s2227_s0, %s1297_s25  ;;  %s240_s8 = scalar_lea.vmem [#allocation4], %s1261_s20 }
  0x1f   : > { %s2247_s19 = scalar_select %p1788_p6, 1, 0 }
  0x20   : > { %s247_s7 = sshll.u32 %s245_s30, 4  ;;  %s249_s9 = sshll.u32 %s240_s8, 4  ;;  %s248_s7 = int_to_ptr.hbm [resolvable:$true] %s247_s7  ;;  %s250_s9 = int_to_ptr.vmem [resolvable:$true] %s249_s9 }
  0x21   : > { %2248 = sst [smem:[#allocation21_spill]] %s2247_s19  ;;  %p1799_p7 = pnand %p1357_p4, %p1770_p12 }
  0x22   : > { %s264_s12 = sand.u32 1, %s1666_s24   ;;  %s1264_s13 = sshll.u32 %s1786_s18, 4 }
  0x23   : > { %s237_s3 = scalar_lea.sflag [#allocation5], %s1786_s18  ;;  %s1500_s14 = sshra.s32 %s248_s7, 4  ;;  %s1501_s14 = int_to_ptr.hbm [resolvable:$true] %s1500_s14 }
  0x24   : > { %s1502_s23 = scalar_lea.hbm %s1501_s14, 8  ;;  %p1504_p9 = pneg %p1799_p7 }
  0x25   : > { %p1503_p8 = scmp.ne.s32.totalorder %s1501_s14, %s1502_s23  ;;  %s1507_s25 = scalar_lea.hbm %s2227_s0, 16 }
  0x26   : > { %p1508_p12 = scmp.lt.s32.totalorder %s1501_s14, %s2227_s0  ;;  %p1509_p2 = scmp.lt.s32.totalorder %s1507_s25, %s1502_s23 }
  0x27   : > { %p1505_p10 = pnand %p1504_p9, %p1503_p8 }
  0x28   : > { %p1510_p4 = por %p1509_p2, %p1508_p12 }
  0x29   : > { %p1506_p11 = pneg %p1505_p10 }
  0x2b   : > { %p1511_p5 = pnand %p1510_p4, %p1506_p11 }
  0x2d   : > { %1514 = shalt.err (!%p1511_p5)
}
  0x2e   : > { %1345 = dma.hbm_to_vmem [thread:$0]  (!%p1799_p7), %s248_s7, 128, %s250_s9, %s237_s3  }
  0x2f   : > { %s1298_s18 = sshll.u32 %s1666_s24, 4  ;;  %s268_s30 = scalar_lea.vmem [#allocation7], %s1264_s13 }
  0x30   : > { %s277_s8 = sshll.u32 %s268_s30, 4  ;;  %s273_s15 = scalar_lea.hbm %s2229_s2, %s1298_s18  ;;  %s278_s8 = int_to_ptr.vmem [resolvable:$true] %s277_s8 }
  0x31   : > { %s275_s20 = sshll.u32 %s273_s15, 4  ;;  %s265_s14 = scalar_lea.sflag [#allocation8], %s264_s12  ;;  %s276_s20 = int_to_ptr.hbm [resolvable:$true] %s275_s20 }
  0x32   : > { %s1530_s23 = sshra.s32 %s276_s20, 4  ;;  %s1537_s9 = scalar_lea.hbm %s2229_s2, 32  ;;  %s1531_s23 = int_to_ptr.hbm [resolvable:$true] %s1530_s23 }
  0x33   : > { %s1532_s25 = scalar_lea.hbm %s1531_s23, 16  ;;  %p1538_p11 = scmp.lt.s32.totalorder %s1531_s23, %s2229_s2 }
  0x34   : > { %p1533_p5 = scmp.ne.s32.totalorder %s1531_s23, %s1532_s25  ;;  %p1539_p12 = scmp.lt.s32.totalorder %s1537_s9, %s1532_s25 }
  0x36   : > { %p1535_p8 = pnand %p1533_p5, %p1504_p9  ;;  %p1540_p2 = por %p1539_p12, %p1538_p11 }
  0x38   : > { %p1536_p10 = pneg %p1535_p8 }
  0x3a   : > { %p1541_p4 = pnand %p1540_p2, %p1536_p10 }
  0x3c   : > { %1544 = shalt.err (!%p1541_p4)
}
  0x3d   : > { %1348 = dma.hbm_to_vmem [thread:$0]  (!%p1799_p7), %s276_s20, 256, %s278_s8, %s265_s14  }
  0x3e   : > { %286 = sbr.rel (%p1745_p3) target bundleno = 502 (0x1f6), region = 40  ;;  %s1837_s11 = sand.u32 (!%p1745_p3), 1, %s1658_s22  }
  0x3f   : > { %s1268_s19 = sshll.u32 (!%p1745_p3), %s1837_s11, 3  ;;  %s289_s12 = scalar_lea.sflag (!%p1745_p3), [#allocation5], %s1837_s11 }
  0x40   : > { %s292_s27 = scalar_lea.vmem (!%p1745_p3), [#allocation4], %s1268_s19 }
  0x43   : > { %1633 = dma.done.wait (%p1776_p13), %s289_s12, 128  }
  0x44   : > { %1635 = vsyncadd (%p1776_p13), %s289_s12, 4294967168  ;;  %s298_s10 = sand.u32 1, %s1740_s28   ;;  %s1847_s29 = sshll.u32 %s1837_s11, 4 }
  0x45   : > { %s299_s18 = scalar_lea.sflag [#allocation8], %s298_s10  ;;  %s302_s30 = scalar_lea.vmem [#allocation7], %s1847_s29 }
  0x46   : > { %1637 = dma.done.wait (%p1776_p13), %s299_s18, 256  }
  0x47   : > { %1639 = vsyncadd (%p1776_p13), %s299_s18, 4294967040 }
  0x48   : > { %1641 = dma.done.wait (%p50_p1), [#allocation8], 1024  }
  0x49   : > { %1643 = vsyncadd (%p50_p1), [#allocation8], 4294966272  ;;  %vm360_vm0 = vcmask 138240   ;;  %p352_p3 = scmp.lt.s32.totalorder %s1740_s28, 1  ;;  %v1671_v0 = vmov 0.0   ;;  %v366_v2 = vld [vmem:[%s292_s27] sm:$0xff]  ;;  %v387_v23 = vlaneseq }
  0x4a   : > { %365 = vst.msk [vmem:[#allocation2 + $0x38] sm:$0xff] %vm360_vm0, %v1671_v0  ;;  %s1672_s23 = smov 113   ;;  %s1673_s25 = smov 112   ;;  %vm691_vm1 = vcmask 916480   ;;  %vm650_vm2 = vcmask 924672   ;;  %vm609_vm4 = vcmask 1039360  }
  0x4b   : > { %s353_s8 = scalar_select %p352_p3, %s1740_s28, 1  ;;  %358 = vst [vmem:[#allocation2 + $0x8] sm:$0xff] %v1671_v0  ;;  %v388_v26 = vand.u32 127, %v387_v23  ;;  %vm560_vm8 = vcmask 7168   ;;  %vm519_vm9 = vcmask 121856   ;;  %vm480_vm10 = vcmask 130048  }
  0x4c   : > { %359 = vst [vmem:[#allocation2 + $0x10] sm:$0xff] %v1671_v0  ;;  %s1674_s3 = smov 127   ;;  %s1675_s7 = smov 1   ;;  %vm728_vm11 = vcmask 908288   ;;  %v750_v43 = vld [vmem:[#allocation9 + $0x28] sm:$0xff]  ;;  %v752_v61 = vld [vmem:[#allocation9 + $0x38] sm:$0xff] }
  0x4d   : > { %s1299_s16 = sshll.u32 %s353_s8, 4  ;;  %361 = vst.msk [vmem:[#allocation2 + $0x18] sm:$0xff] %vm360_vm0, %v1671_v0  ;;  %s1676_s9 = smov 15   ;;  %v389_v31 = vadd.s32 128, %v388_v26  ;;  %v394_v49 = vand.u32 15, %v388_v26 }
  0x4e   : > { %s356_s14 = scalar_lea.vmem %s2228_s1, %s1299_s16  ;;  %363 = vst [vmem:[#allocation2 + $0x28] sm:$0xff] %v1671_v0  ;;  %s1677_s13 = smov 16  }
  0x4f   : > { %v376_v1 = vld [vmem:[%s356_s14 + $0x8] sm:$0xff]  ;;  %v375_v3 = vld [vmem:[%s356_s14] sm:$0xff]  ;;  %364 = vst [vmem:[#allocation2 + $0x30] sm:$0xff] %v1671_v0  ;;  %s1678_s26 = smov 17   ;;  %s1679_s19 = smov 111   ;;  %v401_v34 = vand.u32 15, %v389_v31 }
  0x50   : > { %v380_v5 = vrot.slane %v376_v1, 4  ;;  %v379_v6 = vrot.slane %v375_v3, 4  ;;  %368 = vst [vmem:[#allocation1] ss:$2 sm:$0xff] %v366_v2  ;;  %vm1951_vm6 = vcmp.ge.s32.totalorder %v394_v49, 1  ;;  %vm1964_vm7 = vcmp.lt.s32.totalorder %v394_v49, 15 }
  0x51   : > { %v1870_v4 = vld [vmem:[#allocation2 + $0x38] sm:$0xff]  ;;  %vm1932_vm3 = vcmp.ge.s32.totalorder %v401_v34, 1  ;;  %vm1940_vm5 = vcmp.lt.s32.totalorder %v401_v34, 15  ;;  %s1300_s14 = sshll.u32 %s1740_s28, 4  ;;  %s1079_s12 = scalar_lea.sflag [#allocation12], %s1837_s11 }
  0x52   : > { %648 = vrot.lane.b32.xlu1 %v1870_v4, %s1672_s23  ;;  %386 = vst [vmem:[#allocation2 + $0x30] sm:$0xf] %v380_v5  ;;  %s1580_s8 = scalar_lea.hbm %s2233_s6, 32 }
  0x53   : > { %384 = vst [vmem:[#allocation2 + $0x10] sm:$0xf0] %v380_v5 }
  0x54   : > { %v628_v7 = vld [vmem:[#allocation2 + $0x18] sm:$0xff]  ;;  %385 = vst [vmem:[#allocation2 + $0x28] sm:$0xf] %v379_v6 }
  0x55   : > { %642 = vrot.lane.b32.xlu2 %v628_v7, %s1672_s23  ;;  %383 = vst [vmem:[#allocation2 + $0x8] sm:$0xf0] %v379_v6 }
  0x57   : > { %v370_v8 = vld.sshfl [vmem:[#allocation1 + $0x8] sm:$0xff pattern:$0x75316420]  ;;  %v369_v9 = vld.sshfl [vmem:[#allocation1] sm:$0xff pattern:$0x75316420] }
  0x58   : > { %374 = vst [vmem:[#allocation2 + $0x10] sm:$0xf] %v370_v8 }
  0x59   : > { %v1876_v10 = vld [vmem:[#allocation2 + $0x30] sm:$0xff]  ;;  %373 = vst [vmem:[#allocation2 + $0x8] sm:$0xf] %v369_v9 }
  0x5a   : > { %646 = vrot.lane.b32.xlu1 %v1876_v10, %s1672_s23  ;;  %v1405_v11 = vpack.i.bf16 %v1870_v4, %v1876_v10 }
  0x5b   : > { %v1887_v14 = vld [vmem:[#allocation2 + $0x28] sm:$0xff] }
  0x5c   : > { %1406 = vrot.lane.b32.xlu0 %v1405_v11, %s1673_s25  ;;  %v1420_v18 = vpack.i.bf16 %v1876_v10, %v1887_v14 }
  0x5d   : > { %607 = vrot.lane.b32.xlu2 %v1870_v4, %s1674_s3 }
  0x5f   : > { %v1883_v12 = vld [vmem:[#allocation2 + $0x10] sm:$0xff] }
  0x60   : > { %v1410_v13 = vpack.i.bf16 %v628_v7, %v1883_v12  ;;  %v1891_v15 = vld [vmem:[#allocation2 + $0x8] sm:$0xff] }
  0x61   : > { %v1415_v16 = vpack.i.bf16 %v1891_v15, %v1887_v14  ;;  %v1425_v17 = vpack.i.bf16 %v1883_v12, %v1891_v15 }
  0x62   : > { %605 = vrot.lane.b32.xlu1 %v1876_v10, %s1674_s3 }
  0x64   : > { %1411 = vrot.lane.b32.xlu0 %v1410_v13, %s1673_s25 }
  0x65   : > { %644 = vrot.lane.b32.xlu2 %v1887_v14, %s1672_s23 }
  0x6a   : > { %601 = vrot.lane.b32.xlu1 %v628_v7, %s1674_s3 }
  0x6c   : > { %1416 = vrot.lane.b32.xlu0 %v1415_v16, %s1673_s25 }
  0x6d   : > { %640 = vrot.lane.b32.xlu2 %v1883_v12, %s1672_s23 }
  0x72   : > { %603 = vrot.lane.b32.xlu1 %v1887_v14, %s1674_s3 }
  0x74   : > { %599 = vrot.lane.b32.xlu0 %v1883_v12, %s1674_s3 }
  0x75   : > { %556 = vrot.lane.b32.xlu2 %v1887_v14, %s1675_s7 }
  0x7a   : > { %597 = vrot.lane.b32.xlu1 %v1891_v15, %s1674_s3  ;;  %s1105_s3 = scalar_lea.hbm %s2233_s6, %s1300_s14 }
  0x7c   : > { %638 = vrot.lane.b32.xlu0 %v1891_v15, %s1672_s23 }
  0x7d   : > { %550 = vrot.lane.b32.xlu2 %v1891_v15, %s1675_s7 }
  0x82   : > { %515 = vrot.lane.b32.xlu1 %v1887_v14, %s1676_s9 }
  0x84   : > { %558 = vrot.lane.b32.xlu0 %v1876_v10, %s1675_s7 }
  0x85   : > { %517 = vrot.lane.b32.xlu2 %v1876_v10, %s1676_s9 }
  0x8a   : > { %511 = vrot.lane.b32.xlu1 %v1883_v12, %s1676_s9 }
  0x8c   : > { %552 = vrot.lane.b32.xlu0 %v1883_v12, %s1675_s7 }
  0x8d   : > { %554 = vrot.lane.b32.xlu2 %v1671_v0, %s1675_s7 }
  0x92   : > { %548 = vrot.lane.b32.xlu1 %v1671_v0, %s1675_s7  ;;  %s351_s7 = scalar_lea.vmem [#allocation11], %s1847_s29 }
  0x94   : > { %509 = vrot.lane.b32.xlu0 %v1891_v15, %s1676_s9 }
  0x95   : > { %1426 = vrot.lane.b32.xlu2 %v1425_v17, %s1677_s13 }
  0x9a   : > { %436 = vrot.lane.b32.xlu1 %v1887_v14, %s1678_s26 }
  0x9c   : > { %1421 = vrot.lane.b32.xlu0 %v1420_v18, %s1677_s13 }
  0x9d   : > { %438 = vrot.lane.b32.xlu2 %v1876_v10, %s1678_s26 }
  0xa2   : > { %430 = vrot.lane.b32.xlu1 %v1891_v15, %s1678_s26 }
  0xa4   : > { %513 = vrot.lane.b32.xlu0 %v1671_v0, %s1676_s9 }
  0xa5   : > { %432 = vrot.lane.b32.xlu2 %v1883_v12, %s1678_s26 }
  0xaa   : > { %724 = vrot.lane.b32.xlu1 %v1876_v10, %s1679_s19 }
  0xac   : > { %507 = vrot.lane.b32.xlu0 %v1671_v0, %s1676_s9  ;;  %s1107_s9 = sshll.u32 %s351_s7, 4  ;;  %s1108_s9 = int_to_ptr.vmem [resolvable:$true] %s1107_s9 }
  0xad   : > { %726 = vrot.lane.b32.xlu2 %v1870_v4, %s1679_s19 }
  0xaf   : > { %v643_v19 = vpop.permute.xlu2 %642 }
  0xb2   : > { %720 = vrot.lane.b32.xlu1 %v628_v7, %s1679_s19 }
  0xb4   : > { %1431 = vrot.lane.b32.xlu0 %v1671_v0, %s1677_s13  ;;  %s1109_s13 = sshll.u32 %s1105_s3, 4  ;;  %s1110_s13 = int_to_ptr.hbm [resolvable:$true] %s1109_s13 }
  0xb5   : > { %434 = vrot.lane.b32.xlu2 %v1671_v0, %s1678_s26  ;;  %s1574_s27 = sshra.s32 %s1110_s13, 4  ;;  %s1575_s27 = int_to_ptr.hbm [resolvable:$true] %s1574_s27 }
  0xb6   : > { %s1576_s10 = scalar_lea.hbm %s1575_s27, 16  ;;  %p1581_p9 = scmp.lt.s32.totalorder %s1575_s27, %s2233_s6 }
  0xb7   : > { %v608_v20 = vpop.permute.xlu2 %607  ;;  %p1577_p1 = scmp.ne.s32.totalorder %s1575_s27, %s1576_s10  ;;  %p1582_p5 = scmp.lt.s32.totalorder %s1580_s8, %s1576_s10 }
  0xb9   : > { %p1578_p13 = pnand %p1577_p1, %p1780_p0  ;;  %p1583_p8 = por %p1582_p5, %p1581_p9 }
  0xba   : > { %722 = vrot.lane.b32.xlu1 %v1887_v14, %s1679_s19 }
  0xbb   : > { %p1579_p7 = pneg %p1578_p13 }
  0xbc   : > { %718 = vrot.lane.b32.xlu0 %v1883_v12, %s1679_s19 }
  0xbd   : > { %716 = vrot.lane.b32.xlu2 %v1891_v15, %s1679_s19  ;;  %s2176_s19 = scalar_lea.hbm %s2232_s5, %s1300_s14  ;;  %p1584_p10 = pnand %p1583_p8, %p1579_p7 }
  0xbf   : > { %v645_v21 = vpop.permute.xlu2 %644 }
  0xc4   : > { %v649_v22 = vpop.permute.xlu1 %648  ;;  %428 = vrot.lane.b32.xlu0 %v1671_v0, %s1678_s26 }
  0xc7   : > { %v641_v24 = vpop.permute.xlu2 %640 }
  0xc8   : > { %v652_v42 = vsel %vm650_vm2, %v641_v24, %v643_v19 }
  0xcc   : > { %v647_v25 = vpop.permute.xlu1 %646 }
  0xcd   : > { %v654_v40 = vsel %vm650_vm2, %v647_v25, %v649_v22  ;;  %v653_v54 = vsel %vm650_vm2, %v645_v21, %v647_v25 }
  0xce   : > { %v1407_v27 = vpop.permute.xlu0 %1406 }
  0xcf   : > { %v1409_v28 = vunpack.i.h.bf16 %v1407_v27  ;;  %v1408_v29 = vunpack.i.l.bf16 %v1407_v27  ;;  %v557_v33 = vpop.permute.xlu2 %556 }
  0xd1   : > { %v695_v30 = vsel %vm691_vm1, %v1408_v29, %v1409_v28  ;;  %v745_v28 = vld [vmem:[#allocation9] sm:$0xff] }
  0xd2   : > { %883 = vmatpush.msra.mxu2 %v695_v30  ;;  %v789_v30 = vld [vmem:[%s2231_s4] sm:$0xff] }
  0xd4   : > { %v606_v32 = vpop.permute.xlu1 %605 }
  0xd5   : > { %v613_v48 = vsel %vm609_vm4, %v606_v32, %v608_v20 }
  0xd6   : > { %v1412_v35 = vpop.permute.xlu0 %1411 }
  0xd7   : > { %v1414_v36 = vunpack.i.h.bf16 %v1412_v35  ;;  %v1413_v37 = vunpack.i.l.bf16 %v1412_v35  ;;  %v551_v45 = vpop.permute.xlu2 %550 }
  0xd9   : > { %v693_v38 = vsel %vm691_vm1, %v1413_v37, %v1414_v36  ;;  %v747_v36 = vld [vmem:[#allocation9 + $0x10] sm:$0xff] }
  0xda   : > { %884 = vmatpush.msra.mxu2 %v693_v38  ;;  %v790_v38 = vld [vmem:[%s2231_s4 + $0x8] sm:$0xff] }
  0xdc   : > { %v602_v41 = vpop.permute.xlu1 %601  ;;  %1314 = vmatpush.msk.msra.mxu2 %vm1932_vm3, %v654_v40 }
  0xde   : > { %1315 = vmatpush.msk.msra.mxu2 %vm1932_vm3, %v652_v42  ;;  %v1417_v44 = vpop.permute.xlu0 %1416  ;;  %v749_v42 = vld [vmem:[#allocation9 + $0x20] sm:$0xff] }
  0xdf   : > { %v1419_v46 = vunpack.i.h.bf16 %v1417_v44  ;;  %v1418_v47 = vunpack.i.l.bf16 %v1417_v44  ;;  %v518_v57 = vpop.permute.xlu2 %517 }
  0xe0   : > { %1316 = vmatpush.msk.msra.mxu2 %vm1940_vm5, %v613_v48 }
  0xe1   : > { %v694_v50 = vsel %vm691_vm1, %v1418_v47, %v1408_v29  ;;  %v692_v51 = vsel %vm691_vm1, %v1419_v46, %v1413_v37  ;;  %v792_v47 = vld [vmem:[%s2231_s4 + $0x18] sm:$0xff] }
  0xe2   : > { %825 = vmatpush.msra.mxu0 %v694_v50 }
  0xe4   : > { %v604_v53 = vpop.permute.xlu1 %603  ;;  %826 = vmatpush.msra.mxu0 %v692_v51 }
  0xe5   : > { %v612_v62 = vsel %vm609_vm4, %v604_v53, %v606_v32  ;;  %v1680_v32 = vmov 0  }
  0xe6   : > { %v600_v55 = vpop.permute.xlu0 %599  ;;  %1302 = vmatpush.msk.msra.mxu0 %vm1951_vm6, %v653_v54  ;;  %1435 = vset.pattern.permute.xlu0 %v1680_v32 }
  0xe7   : > { %v611_v56 = vsel %vm609_vm4, %v600_v55, %v602_v41  ;;  %v555_v63 = vpop.permute.xlu2 %554  ;;  %1436 = vset.pattern.permute.xlu1 %v1680_v32  ;;  %795 = vperm.xlu0 %1435, %v789_v30  }
  0xe8   : > { %1317 = vmatpush.msk.msra.mxu2 %vm1940_vm5, %v611_v56  ;;  %v563_v4 = vsel %vm560_vm8, %v555_v63, %v557_v33  ;;  %1437 = vset.pattern.permute.xlu2 %v1680_v32 }
  0xe9   : > { %800 = vperm.xlu1 %1436, %v790_v38  }
  0xea   : > { %889 = vmatpush.msra.mxu2 %v1876_v10 }
  0xec   : > { %v598_v58 = vpop.permute.xlu1 %597  ;;  %890 = vmatpush.msra.mxu2 %v1883_v12 }
  0xed   : > { %v610_v0 = vsel %vm609_vm4, %v598_v58, %v600_v55  ;;  %v746_v55 = vld [vmem:[#allocation9 + $0x8] sm:$0xff]  ;;  %v751_v58 = vld [vmem:[#allocation9 + $0x30] sm:$0xff] }
  0xee   : > { %v639_v59 = vpop.permute.xlu0 %638 }
  0xef   : > { %v651_v60 = vsel %vm650_vm2, %v639_v59, %v641_v24  ;;  %v1982_v5 = vpop.permute.xlu2 %1426  ;;  %v791_v59 = vld [vmem:[%s2231_s4 + $0x10] sm:$0xff] }
  0xf0   : > { %1303 = vmatpush.msk.msra.mxu0 %vm1951_vm6, %v651_v60  ;;  %v1429_v16 = vunpack.i.h.bf16 %v1982_v5  ;;  %v1428_v17 = vunpack.i.l.bf16 %v1982_v5  ;;  %805 = vperm.xlu2 %1437, %v791_v59  }
  0xf1   : > { %810 = vperm.xlu1 %1436, %v792_v47  }
  0xf2   : > { %1304 = vmatpush.msk.msra.mxu0 %vm1964_vm7, %v612_v62  ;;  %v482_v23 = vsel %vm480_vm10, %v1428_v17, %v1429_v16  ;;  %v748_v62 = vld [vmem:[#allocation9 + $0x18] sm:$0xff] }
  0xf4   : > { %1305 = vmatpush.msk.msra.mxu0 %vm1964_vm7, %v610_v0  ;;  %v516_v1 = vpop.permute.xlu1 %515 }
  0xf5   : > { %v523_v9 = vsel %vm519_vm9, %v516_v1, %v518_v57 }
  0xf6   : > { %v559_v2 = vpop.permute.xlu0 %558  ;;  %831 = vmatpush.msra.mxu0 %v1887_v14 }
  0xf7   : > { %v564_v3 = vsel %vm560_vm8, %v557_v33, %v559_v2  ;;  %v439_v12 = vpop.permute.xlu2 %438 }
  0xf8   : > { %832 = vmatpush.msra.mxu0 %v1891_v15  ;;  %1318 = vmatpush.msk.msra.mxu2 %vm1932_vm3, %v564_v3 }
  0xfa   : > { %1306 = vmatpush.msk.msra.mxu0 %vm1951_vm6, %v563_v4 }
  0xfc   : > { %v512_v6 = vpop.permute.xlu1 %511 }
  0xfe   : > { %v553_v7 = vpop.permute.xlu0 %552 }
  0xff   : > { %v562_v8 = vsel %vm560_vm8, %v551_v45, %v553_v7  ;;  %v433_v21 = vpop.permute.xlu2 %432 }
 0x100   : > { %1319 = vmatpush.msk.msra.mxu2 %vm1932_vm3, %v562_v8 }
 0x102   : > { %1320 = vmatpush.msk.msra.mxu2 %vm1940_vm5, %v523_v9 }
 0x104   : > { %v549_v10 = vpop.permute.xlu1 %548 }
 0x105   : > { %v561_v11 = vsel %vm560_vm8, %v549_v10, %v551_v45 }
 0x106   : > { %v510_v13 = vpop.permute.xlu0 %509  ;;  %1307 = vmatpush.msk.msra.mxu0 %vm1951_vm6, %v561_v11 }
 0x107   : > { %v521_v14 = vsel %vm519_vm9, %v510_v13, %v512_v6  ;;  %v727_v31 = vpop.permute.xlu2 %726 }
 0x108   : > { %1321 = vmatpush.msk.msra.mxu2 %vm1940_vm5, %v521_v14 }
 0x10c   : > { %v437_v15 = vpop.permute.xlu1 %436 }
 0x10d   : > { %v443_v24 = vsel %vm360_vm0, %v437_v15, %v439_v12 }
 0x10e   : > { %v1422_v18 = vpop.permute.xlu0 %1421 }
 0x10f   : > { %v1424_v19 = vunpack.i.h.bf16 %v1422_v18  ;;  %v1423_v20 = vunpack.i.l.bf16 %v1422_v18  ;;  %v435_v39 = vpop.permute.xlu2 %434 }
 0x110   : > { %v442_v53 = vsel %vm360_vm0, %v435_v39, %v437_v15 }
 0x111   : > { %v484_v22 = vsel %vm480_vm10, %v1423_v20, %v1424_v19 }
 0x112   : > { %895 = vmatpush.msra.mxu2 %v484_v22 }
 0x114   : > { %896 = vmatpush.msra.mxu2 %v482_v23  ;;  %v431_v25 = vpop.permute.xlu1 %430 }
 0x115   : > { %v441_v26 = vsel %vm360_vm0, %v431_v25, %v433_v21 }
 0x116   : > { %v514_v27 = vpop.permute.xlu0 %513  ;;  %1322 = vmatpush.msk.msra.mxu2 %vm1932_vm3, %v443_v24 }
 0x117   : > { %v522_v29 = vsel %vm519_vm9, %v514_v27, %v516_v1  ;;  %v717_v50 = vpop.permute.xlu2 %716 }
 0x118   : > { %1308 = vmatpush.msk.msra.mxu0 %vm1964_vm7, %v522_v29  ;;  %1323 = vmatpush.msk.msra.mxu2 %vm1932_vm3, %v441_v26 }
 0x119   : > { %899 = vmatmul.f32.vlgmr.msra.gmra.mxu2 %v745_v28 }
 0x11c   : > { %v725_v33 = vpop.permute.xlu1 %724 }
 0x11d   : > { %v732_v34 = vsel %vm728_vm11, %v725_v33, %v727_v31 }
 0x11e   : > { %v508_v35 = vpop.permute.xlu0 %507  ;;  %1324 = vmatpush.msk.msra.mxu3 %vm1940_vm5, %v732_v34 }
 0x11f   : > { %v520_v37 = vsel %vm519_vm9, %v508_v35, %v510_v13 }
 0x120   : > { %1309 = vmatpush.msk.msra.mxu0 %vm1964_vm7, %v520_v37 }
 0x121   : > { %902 = vmatmul.f32.gmra.mxu2 %v747_v36 }
 0x124   : > { %v721_v40 = vpop.permute.xlu1 %720 }
 0x126   : > { %v1432_v41 = vpop.permute.xlu0 %1431 }
 0x127   : > { %v1434_v44 = vunpack.i.h.bf16 %v1432_v41  ;;  %v1433_v45 = vunpack.i.l.bf16 %v1432_v41 }
 0x129   : > { %v483_v46 = vsel %vm480_vm10, %v1433_v45, %v1423_v20  ;;  %905 = vmatmul.f32.gmra.mxu2 %v749_v42  ;;  %v481_v48 = vsel %vm480_vm10, %v1434_v44, %v1428_v17 }
 0x12a   : > { %837 = vmatpush.msra.mxu0 %v483_v46 }
 0x12c   : > { %v723_v49 = vpop.permute.xlu1 %722  ;;  %838 = vmatpush.msra.mxu0 %v481_v48 }
 0x12d   : > { %v731_v51 = vsel %vm728_vm11, %v723_v49, %v725_v33 }
 0x12e   : > { %1312 = vmatpush.msk.msra.mxu1 %vm1964_vm7, %v731_v51  ;;  %v719_v54 = vpop.permute.xlu0 %718  ;;  %1310 = vmatpush.msk.msra.mxu0 %vm1951_vm6, %v442_v53 }
 0x12f   : > { %v729_v56 = vsel %vm728_vm11, %v717_v50, %v719_v54  ;;  %v730_v57 = vsel %vm728_vm11, %v719_v54, %v721_v40 }
 0x130   : > { %1313 = vmatpush.msk.msra.mxu1 %vm1964_vm7, %v729_v56  ;;  %1325 = vmatpush.msk.msra.mxu3 %vm1940_vm5, %v730_v57 }
 0x131   : > { %1279 = vmatmul.msk.f32.vlgmr.msra.gmra.mxu3 %vm480_vm10, %v746_v55  ;;  %1275 = vmatmul.msk.f32.vlgmr.msra.gmra.mxu1 %vm480_vm10, %v746_v55 }
 0x132   : > { %908 = vmatmul.f32.gmra.mxu2 %v751_v58 }
 0x136   : > { %v429_v60 = vpop.permute.xlu0 %428 }
 0x137   : > { %v440_v63 = vsel %vm360_vm0, %v429_v60, %v431_v25 }
 0x138   : > { %1311 = vmatpush.msk.msra.mxu0 %vm1951_vm6, %v440_v63 }
 0x139   : > { %841 = vmatmul.f32.vlgmr.msra.gmra.mxu0 %v745_v28  ;;  %1280 = vmatmul.msk.f32.gmra.mxu3 %vm480_vm10, %v748_v62 }
 0x13a   : > { %1276 = vmatmul.msk.f32.gmra.mxu1 %vm480_vm10, %v748_v62 }
 0x141   : > { %844 = vmatmul.f32.gmra.mxu0 %v747_v36  ;;  %1281 = vmatmul.msk.f32.gmra.mxu3 %vm480_vm10, %v750_v43 }
 0x142   : > { %1277 = vmatmul.msk.f32.gmra.mxu1 %vm480_vm10, %v750_v43 }
 0x149   : > { %847 = vmatmul.f32.gmra.mxu0 %v749_v42  ;;  %1282 = vmatmul.msk.f32.gmra.mxu3 %vm480_vm10, %v752_v61 }
 0x14a   : > { %1278 = vmatmul.msk.f32.gmra.mxu1 %vm480_vm10, %v752_v61  ;;  %v806_v16 = vpop.permute.xlu2 %805 }
 0x151   : > { %850 = vmatmul.f32.gmra.mxu0 %v751_v58 }
 0x159   : > { %v796_v0 = vpop.permute.xlu0 %795 }
 0x15b   : > { %v801_v9 = vpop.permute.xlu1 %800 }
 0x163   : > { %v811_v38 = vpop.permute.xlu1 %810 }
 0x19c   : > { %v900_v52 = vpop.f32.mrf.mxu2 }
 0x19d   : > { %v901_v1 = vadd.f32 %v900_v52, %v796_v0 }
 0x1a4   : > { %v903_v3 = vpop.f32.mrf.mxu2 }
 0x1a5   : > { %v904_v10 = vadd.f32 %v903_v3, %v801_v9 }
 0x1ac   : > { %v906_v17 = vpop.f32.mrf.mxu2 }
 0x1ad   : > { %v907_v24 = vadd.f32 %v906_v17, %v806_v16 }
 0x1ae   : > { %v871_v2 = vpop.f32.mrf.mxu1 }
 0x1b4   : > { %v929_v4 = vpop.f32.mrf.mxu3 }
 0x1b5   : > { %v930_v5 = vadd.f32 %v929_v4, %v901_v1  ;;  %v909_v37 = vpop.f32.mrf.mxu2 }
 0x1b6   : > { %v842_v6 = vpop.f32.mrf.mxu0  ;;  %v910_v44 = vadd.f32 %v909_v37, %v811_v38 }
 0x1b7   : > { %v1284_v7 = vmul.f32 -1.442695, %v930_v5  ;;  %v843_v8 = vadd.f32 %v842_v6, %v796_v0  ;;  %v874_v14 = vpop.f32.mrf.mxu1 }
 0x1b9   : > { %1438 = vpow2.f32 %v1284_v7  ;;  %v872_v11 = vadd.f32 %v871_v2, %v843_v8 }
 0x1bb   : > { %v1283_v12 = vmul.f32 -1.442695, %v872_v11 }
 0x1bc   : > { %v932_v13 = vpop.f32.mrf.mxu3 }
 0x1bd   : > { %1440 = vpow2.f32 %v1283_v12  ;;  %v933_v15 = vadd.f32 %v932_v13, %v904_v10 }
 0x1be   : > { %v845_v18 = vpop.f32.mrf.mxu0 }
 0x1bf   : > { %v1439_v19 = vpop.eup %1438  ;;  %v1286_v20 = vmul.f32 -1.442695, %v933_v15  ;;  %v846_v21 = vadd.f32 %v845_v18, %v801_v9  ;;  %v877_v31 = vpop.f32.mrf.mxu1 }
 0x1c0   : > { %v2050_v22 = vadd.f32 1.0, %v1439_v19 }
 0x1c1   : > { %1442 = vpow2.f32 %v1286_v20  ;;  %v875_v23 = vadd.f32 %v874_v14, %v846_v21  ;;  %v1058_v21 = vld [vmem:[%s302_s30 + $0x8] sm:$0xff] }
 0x1c2   : > { %1444 = vrcp.f32 %v2050_v22  ;;  %v989_v51 = vand.u32 2147483647, %v2050_v22  ;;  %v991_v54 = vand.u32 2147483648, %v2050_v22  ;;  %vm985_vm12 = vweird.f32 %v2050_v22 }
 0x1c3   : > { %v1441_v25 = vpop.eup %1440  ;;  %v1285_v26 = vmul.f32 -1.442695, %v875_v23 }
 0x1c4   : > { %v2053_v27 = vadd.f32 1.0, %v1441_v25  ;;  %v935_v28 = vpop.f32.mrf.mxu3  ;;  %vm2077_vm13 = vcmp.eq.f32.partialorder %v989_v51, 8.507059e+37  ;;  %v992_v52 = vor.u32 1.1754944e-38, %v991_v54 }
 0x1c5   : > { %1446 = vpow2.f32 %v1285_v26  ;;  %v936_v29 = vadd.f32 %v935_v28, %v907_v24 }
 0x1c6   : > { %1448 = vrcp.f32 %v2053_v27  ;;  %v848_v30 = vpop.f32.mrf.mxu0  ;;  %vm970_vm15 = vweird.f32 %v2053_v27  ;;  %v974_v8 = vand.u32 2147483647, %v2053_v27  ;;  %v976_v12 = vand.u32 2147483648, %v2053_v27 }
 0x1c7   : > { %v1443_v32 = vpop.eup %1442  ;;  %v1288_v33 = vmul.f32 -1.442695, %v936_v29  ;;  %v849_v34 = vadd.f32 %v848_v30, %v806_v16  ;;  %v880_v62 = vpop.f32.mrf.mxu1 }
 0x1c8   : > { %v2056_v35 = vpop.eup %1444  ;;  %v2058_v36 = vadd.f32 1.0, %v1443_v32  ;;  %vm2113_vm6 = vcmp.eq.f32.partialorder %v974_v8, 8.507059e+37 }
 0x1c9   : > { %v981_v39 = vmul.f32 %v2056_v35, %v2050_v22  ;;  %1450 = vpow2.f32 %v1288_v33  ;;  %v878_v40 = vadd.f32 %v877_v31, %v849_v34  ;;  %vm986_vm14 = vweird.f32 %v2056_v35 }
 0x1ca   : > { %1452 = vrcp.f32 %v2058_v36  ;;  %v1021_v5 = vand.u32 2147483648, %v2058_v36  ;;  %v1019_v7 = vand.u32 2147483647, %v2058_v36  ;;  %vm2096_vm1 = vmor %vm985_vm12, %vm986_vm14  ;;  %vm1015_vm2 = vweird.f32 %v2058_v36 }
 0x1cb   : > { %v1447_v41 = vpop.eup %1446  ;;  %v982_v42 = vsub.f32 1.0, %v981_v39  ;;  %v1287_v45 = vmul.f32 -1.442695, %v878_v40 }
 0x1cc   : > { %v2063_v46 = vpop.eup %1448  ;;  %v2065_v47 = vadd.f32 1.0, %v1447_v41  ;;  %v938_v48 = vpop.f32.mrf.mxu3  ;;  %v1022_v19 = vor.u32 1.1754944e-38, %v1021_v5  ;;  %vm1020_vm5 = vcmp.eq.f32.partialorder %v1019_v7, 8.507059e+37 }
 0x1cd   : > { %v966_v49 = vmul.f32 %v2063_v46, %v2053_v27  ;;  %1454 = vpow2.f32 %v1287_v45  ;;  %v939_v50 = vadd.f32 %v938_v48, %v910_v44  ;;  %v983_v53 = vmul.f32 %v2056_v35, %v982_v42  ;;  %v1057_v44 = vld [vmem:[%s302_s30] sm:$0xff] }
 0x1ce   : > { %1456 = vrcp.f32 %v2065_v47  ;;  %v851_v55 = vpop.f32.mrf.mxu0  ;;  %vm971_vm3 = vweird.f32 %v2063_v46  ;;  %v1006_v20 = vand.u32 2147483648, %v2065_v47  ;;  %v1004_v31 = vand.u32 2147483647, %v2065_v47 }
 0x1cf   : > { %v1451_v56 = vpop.eup %1450  ;;  %v967_v57 = vsub.f32 1.0, %v966_v49  ;;  %v852_v58 = vadd.f32 %v851_v55, %v811_v38  ;;  %1458 = vtanh.f32 %v939_v50  ;;  %v984_v61 = vadd.f32 %v2056_v35, %v983_v53  ;;  %vm2126_vm8 = vmor %vm970_vm15, %vm971_vm3 }
 0x1d0   : > { %v1453_v59 = vpop.eup %1452  ;;  %v2073_v60 = vadd.f32 1.0, %v1451_v56  ;;  %vm1000_vm9 = vweird.f32 %v2065_v47  ;;  %v1007_v37 = vor.u32 1.1754944e-38, %v1006_v20  ;;  %v977_v27 = vor.u32 1.1754944e-38, %v976_v12 }
 0x1d1   : > { %v1011_v63 = vmul.f32 %v1453_v59, %v2058_v36  ;;  %v881_v2 = vadd.f32 %v880_v62, %v852_v58  ;;  %v968_v3 = vmul.f32 %v2063_v46, %v967_v57  ;;  %vm1016_vm0 = vweird.f32 %v1453_v59 }
 0x1d2   : > { %1460 = vrcp.f32 %v2073_v60  ;;  %v988_v13 = vsel %vm2096_vm1, %v2056_v35, %v984_v61  ;;  %vm1017_vm4 = vmor %vm1015_vm2, %vm1016_vm0  ;;  %vm1045_vm10 = vweird.f32 %v2073_v60  ;;  %v1051_v40 = vand.u32 2147483648, %v2073_v60 }
 0x1d3   : > { %v1455_v0 = vpop.eup %1454  ;;  %v1012_v1 = vsub.f32 1.0, %v1011_v63  ;;  %v969_v17 = vadd.f32 %v2063_v46, %v968_v3  ;;  %v993_v25 = vsel %vm2077_vm13, %v992_v52, %v988_v13  ;;  %vm1005_vm13 = vcmp.eq.f32.partialorder %v1004_v31, 8.507059e+37 }
 0x1d4   : > { %v1457_v4 = vpop.eup %1456  ;;  %v2087_v6 = vadd.f32 1.0, %v1455_v0  ;;  %v1049_v50 = vand.u32 2147483647, %v2073_v60  ;;  %v1052_v58 = vor.u32 1.1754944e-38, %v1051_v40 }
 0x1d5   : > { %v1013_v9 = vmul.f32 %v1453_v59, %v1012_v1  ;;  %v996_v10 = vmul.f32 %v1457_v4, %v2065_v47  ;;  %v1459_v14 = vpop.eup %1458  ;;  %vm1001_vm7 = vweird.f32 %v1457_v4  ;;  %v973_v34 = vsel %vm2126_vm8, %v2063_v46, %v969_v17 }
 0x1d6   : > { %1462 = vrcp.f32 %v2087_v6  ;;  %v1062_v29 = vmul.f32 %v1459_v14, %v993_v25  ;;  %vm1002_vm11 = vmor %vm1000_vm9, %vm1001_vm7  ;;  %v978_v45 = vsel %vm2113_vm6, %v977_v27, %v973_v34  ;;  %vm1050_vm0 = vcmp.eq.f32.partialorder %v1049_v50, 8.507059e+37 }
 0x1d7   : > { %v997_v15 = vsub.f32 1.0, %v996_v10  ;;  %v1014_v16 = vadd.f32 %v1453_v59, %v1013_v9  ;;  %1464 = vtanh.f32 %v881_v2  ;;  %vm1030_vm1 = vweird.f32 %v2087_v6 }
 0x1d8   : > { %v2108_v18 = vpop.eup %1460  ;;  %v1034_v63 = vand.u32 2147483647, %v2087_v6 }
 0x1d9   : > { %v998_v23 = vmul.f32 %v1457_v4, %v997_v15  ;;  %v1041_v24 = vmul.f32 %v2108_v18, %v2073_v60  ;;  %v1018_v26 = vsel %vm1017_vm4, %v1453_v59, %v1014_v16  ;;  %vm1046_vm12 = vweird.f32 %v2108_v18 }
 0x1da   : > { %v1023_v28 = vsel %vm1020_vm5, %v1022_v19, %v1018_v26  ;;  %vm2160_vm14 = vmor %vm1045_vm10, %vm1046_vm12  ;;  %v1036_v60 = vand.u32 2147483648, %v2087_v6 }
 0x1db   : > { %v1042_v32 = vsub.f32 1.0, %v1041_v24  ;;  %v1060_v33 = vmul.f32 %v1058_v21, %v1023_v28  ;;  %v999_v35 = vadd.f32 %v1457_v4, %v998_v23 }
 0x1dc   : > { %v2134_v36 = vpop.eup %1462 }
 0x1dd   : > { %v1465_v38 = vpop.eup %1464  ;;  %v1043_v39 = vmul.f32 %v2108_v18, %v1042_v32  ;;  %v1026_v41 = vmul.f32 %v2134_v36, %v2087_v6  ;;  %v1064_v42 = vadd.f32 %v1062_v29, %v1060_v33  ;;  %v1003_v46 = vsel %vm1002_vm11, %v1457_v4, %v999_v35 }
 0x1de   : > { %v1008_v49 = vsel %vm1005_vm13, %v1007_v37, %v1003_v46  ;;  %v1061_v53 = vmul.f32 %v1465_v38, %v978_v45  ;;  %vm1031_vm15 = vweird.f32 %v2134_v36 }
 0x1df   : > { %v1044_v47 = vadd.f32 %v2108_v18, %v1043_v39  ;;  %v1027_v48 = vsub.f32 1.0, %v1026_v41  ;;  %1466 = vtanh.f32 %v1064_v42  ;;  %1070 = vst [vmem:[%s351_s7 + $0x8] sm:$0xff] %v1064_v42  ;;  %v1059_v51 = vmul.f32 %v1057_v44, %v1008_v49 }
 0x1e1   : > { %v1028_v55 = vmul.f32 %v2134_v36, %v1027_v48  ;;  %v1063_v56 = vadd.f32 %v1061_v53, %v1059_v51  ;;  %v1048_v57 = vsel %vm2160_vm14, %v2108_v18, %v1044_v47 }
 0x1e2   : > { %v1053_v43 = vsel %vm1050_vm0, %v1052_v58, %v1048_v57 }
 0x1e3   : > { %v1029_v59 = vadd.f32 %v2134_v36, %v1028_v55  ;;  %1468 = vtanh.f32 %v1063_v56  ;;  %1069 = vst [vmem:[%s351_s7] sm:$0xff] %v1063_v56 }
 0x1e5   : > { %v1467_v62 = vpop.eup %1466 }
 0x1e6   : > { %1587 = shalt.err (!%p1584_p10)
}
 0x1e7   : > { %1335 = dma.vmem_to_hbm [thread:$0]  (%p1780_p0), %s1108_s9, 256, %s1110_s13, %s1079_s12   ;;  %vm1032_vm2 = vmor %vm1030_vm1, %vm1031_vm15  ;;  %v1068_v61 = vmul.f32 %v1467_v62, %v1053_v43  ;;  %v1037_v0 = vor.u32 1.1754944e-38, %v1036_v60  ;;  %vm1035_vm3 = vcmp.eq.f32.partialorder %v1034_v63, 8.507059e+37 }
 0x1e8   : > { %v1033_v52 = vsel %vm1032_vm2, %v2134_v36, %v1029_v59  ;;  %s344_s20 = scalar_lea.vmem [#allocation10], %s1847_s29  ;;  %s1094_s23 = sshll.u32 %s2176_s19, 4  ;;  %s1095_s23 = int_to_ptr.hbm [resolvable:$true] %s1094_s23 }
 0x1e9   : > { %1072 = vst [vmem:[%s344_s20 + $0x8] sm:$0xff] %v1068_v61  ;;  %s1092_s14 = sshll.u32 %s344_s20, 4  ;;  %v1469_v1 = vpop.eup %1468  ;;  %v1038_v2 = vsel %vm1035_vm3, %v1037_v0, %v1033_v52  ;;  %s1074_s25 = scalar_lea.sflag [#allocation6], %s1837_s11  ;;  %s1093_s14 = int_to_ptr.vmem [resolvable:$true] %s1092_s14 }
 0x1ea   : > { %v1067_v3 = vmul.f32 %v1469_v1, %v1038_v2  ;;  %s1602_s3 = sshra.s32 %s1095_s23, 4  ;;  %s1608_s13 = scalar_lea.hbm %s2232_s5, 32  ;;  %s1603_s3 = int_to_ptr.hbm [resolvable:$true] %s1602_s3 }
 0x1eb   : > { %s1604_s7 = scalar_lea.hbm %s1603_s3, 16  ;;  %p1609_p4 = scmp.lt.s32.totalorder %s1603_s3, %s2232_s5 }
 0x1ec   : > { %1071 = vst [vmem:[%s344_s20] sm:$0xff] %v1067_v3  ;;  %p1605_p11 = scmp.ne.s32.totalorder %s1603_s3, %s1604_s7  ;;  %p1610_p3 = scmp.lt.s32.totalorder %s1608_s13, %s1604_s7 }
 0x1ee   : > { %p1606_p12 = pnand %p1605_p11, %p1780_p0  ;;  %p1611_p1 = por %p1610_p3, %p1609_p4 }
 0x1f0   : > { %p1607_p2 = pneg %p1606_p12 }
 0x1f2   : > { %p1612_p13 = pnand %p1611_p1, %p1607_p2 }
 0x1f4   : > { %1615 = shalt.err (!%p1612_p13)
}
 0x1f5   : > { %1334 = dma.vmem_to_hbm [thread:$0]  (%p1780_p0), %s1093_s14, 256, %s1095_s23, %s1074_s25  }
 0x1f6 PF: > { %s1121_s19 = sand.u32 1, %s1654_s21   ;;  %p2269_p7 = scmp.ge.s32.totalorder %s1666_s24, 2 }
 0x1f7   : > { %s1122_s12 = scalar_lea.sflag [#allocation6], %s1121_s19 }
 0x1f8   : > { %p1350_p9 = pnand %p2269_p7, %p1788_p6 }
 0x1fa   : > { %p1351_p5 = pneg %p1350_p9 }
 0x1fc   : > { %1645 = dma.done.wait (%p1351_p5), %s1122_s12, 256  }
 0x1fd   : > { %1647 = vsyncadd (%p1351_p5), %s1122_s12, 4294967040  ;;  %s1132_s27 = scalar_lea.sflag [#allocation12], %s1121_s19 }
 0x1fe   : > { %1649 = dma.done.wait (%p1351_p5), %s1132_s27, 256  }
 0x1ff   : > { %1651 = vsyncadd (%p1351_p5), %s1132_s27, 4294967040  ;;  %s2270_s24 = sld [smem:[#allocation19_spill]]  ;;  %s2273_s21 = smov %s1658_s22 }
 0x200   : > { %s2271_s10 = sld [smem:[#allocation18_spill]] }
 0x201   : > { %s2272_s23 = sld [smem:[#allocation20_spill]] }
 0x205   : > { %p26_p0 = scmp.ge.s32.totalorder %s2270_s24, 4  }
 0x206   : > { %s2274_s22 = smov %s2271_s10 }
 0x207   :  { %28 = sbr.rel (!%p26_p0) target bundleno = 11 (0xb), region = 122 }
 0x20c   :  { %1138 = vsyncpa [#allocation5], 1 }
 0x20d   :  { %1140 = vsyncpa [#allocation5 + $0x1], 1 }
 0x20e   :  { %1141 = vsyncpa [#allocation8], 1 }
 0x20f   :  { %1143 = vsyncpa [#allocation8 + $0x1], 1 }
 0x210   :  { %1144 = vsyncpa [#allocation6], 1 }
 0x211   :  { %1146 = vsyncpa [#allocation6 + $0x1], 1 }
 0x212   :  { %1147 = vsyncpa [#allocation12], 1 }
 0x213   :  { %1149 = vsyncpa [#allocation12 + $0x1], 1 }

</bundles_post_ra>
